<compile_context>
chip_gen: v6e
topology: v6e:2x2x1
jax: 0.10.0
libtpu: 0.0.40
codegen_flags: <defaults>
</compile_context>

<pallas_src>
import functools

import jax
import jax.numpy as jnp
from jax.experimental import pallas as pl
from jax.experimental.pallas import tpu as pltpu

_LANE = 128


# ---------------------------------------------------------------------------
# Helpers
# ---------------------------------------------------------------------------
def _round_up(x, m):
    return ((x + m - 1) // m) * m


def _pick_tile(n_pad, pref):
    t = min(pref, n_pad)
    while n_pad % t != 0:
        t -= _LANE
    return max(t, _LANE)


def _pad2d(arr, shape, dtype):
    out = jnp.zeros(shape, dtype=dtype)
    return out.at[: arr.shape[0], : arr.shape[1]].set(arr.astype(dtype))


def _vmem_budget_bytes():
    # ~75% of physical VMEM, capped at 112 MiB:
    #   v5e/v6e (128 MiB) -> 96 MiB,  v7x (64 MiB) -> 48 MiB.
    cap = 64 * 1024 * 1024
    try:
        info = pltpu.get_tpu_info()
        cap = int(getattr(info, "vmem_capacity_bytes", cap) or cap)
    except Exception:
        pass
    return min(int(cap * 3 // 4), 112 * 1024 * 1024)


# ---------------------------------------------------------------------------
# Kernels
# ---------------------------------------------------------------------------
def feat_kernel(x_ref, w_ref, o_ref):
    """Row-tiled feature transform: o = x @ w (f32 accumulate, cast on store)."""
    o_ref[...] = jnp.dot(
        x_ref[...], w_ref[...], preferred_element_type=jnp.float32
    ).astype(o_ref.dtype)


def agg1_fused_kernel(a_ref, h_ref, d_ref, b_ref, w2_ref, o_ref, acc_ref,
                      *, tk, h_resident):
    """conv1 aggregation + ReLU fused with the conv2 feature transform.

    out = ( D^{-1/2} * ReLU(D^{-1/2} * (A' @ H1s) + b1) ) @ W2
    """
    k = pl.program_id(1)

    @pl.when(k == 0)
    def _init():
        acc_ref[...] = jnp.zeros_like(acc_ref)

    if h_resident:
        start = pl.multiple_of(k * tk, tk)
        h_blk = h_ref[pl.ds(start, tk), :]
    else:
        h_blk = h_ref[...]
    acc_ref[...] += jnp.dot(a_ref[...], h_blk, preferred_element_type=jnp.float32)

    @pl.when(k == pl.num_programs(1) - 1)
    def _finalize():
        d = d_ref[...]                                        # (tm, 1) f32
        r = jnp.maximum(d * acc_ref[...] + b_ref[...], 0.0)   # ReLU; dropout = id (eval)
        r = (d * r).astype(w2_ref.dtype)                      # fold conv2 right-norm
        o_ref[...] = jnp.dot(
            r, w2_ref[...], preferred_element_type=jnp.float32
        ).astype(o_ref.dtype)


def agg2_kernel(a_ref, h_ref, d_ref, b_ref, o_ref, *, tk, h_resident):
    """Final aggregation: out = D^{-1/2} * (A' @ H2s) + b2, f32 accumulate in o_ref."""
    k = pl.program_id(1)
    if h_resident:
        start = pl.multiple_of(k * tk, tk)
        h_blk = h_ref[pl.ds(start, tk), :]
    else:
        h_blk = h_ref[...]
    p = jnp.dot(a_ref[...], h_blk, preferred_element_type=jnp.float32)

    @pl.when(k == 0)
    def _first():
        o_ref[...] = p

    @pl.when(k > 0)
    def _accum():
        o_ref[...] += p

    @pl.when(k == pl.num_programs(1) - 1)
    def _finalize():
        o_ref[...] = d_ref[...] * o_ref[...] + b_ref[...]


# ---------------------------------------------------------------------------
# pallas_call wrappers
# ---------------------------------------------------------------------------
def _feat_transform(x, w, out_dtype, row_tile, vmem_limit):
    n_pad, f_pad = x.shape
    c_pad = w.shape[1]
    tm = _pick_tile(n_pad, row_tile)
    return pl.pallas_call(
        feat_kernel,
        out_shape=jax.ShapeDtypeStruct((n_pad, c_pad), out_dtype),
        grid_spec=pltpu.PrefetchScalarGridSpec(
            num_scalar_prefetch=0,
            grid=(n_pad // tm,),
            in_specs=[
                pl.BlockSpec((tm, f_pad), lambda i: (i, 0)),
                pl.BlockSpec((f_pad, c_pad), lambda i: (0, 0)),
            ],
            out_specs=pl.BlockSpec((tm, c_pad), lambda i: (i, 0)),
        ),
        compiler_params=pltpu.CompilerParams(
            dimension_semantics=("parallel",),
            vmem_limit_bytes=vmem_limit,
        ),
        cost_estimate=pl.CostEstimate(
            flops=2 * n_pad * f_pad * c_pad,
            transcendentals=0,
            bytes_accessed=int(
                x.size * x.dtype.itemsize
                + w.size * w.dtype.itemsize
                + n_pad * c_pad * jnp.dtype(out_dtype).itemsize
            ),
        ),
    )(x, w)


def _aggregate(a_pad, h, d_col, b_row, w2, out_dtype, row_tile, k_tile,
               h_resident, vmem_limit):
    n_pad = a_pad.shape[0]
    c_pad = h.shape[1]
    tm = _pick_tile(n_pad, row_tile)
    tk = _pick_tile(n_pad, k_tile)

    # Shrink the A' k-tile if the (double-buffered) working set would blow VMEM.
    def _est(tk_):
        h_bytes = (n_pad if h_resident else tk_) * c_pad * h.dtype.itemsize * 2
        a_bytes = tm * tk_ * a_pad.dtype.itemsize * 2
        acc_out = tm * c_pad * (4 + 2 * jnp.dtype(out_dtype).itemsize)
        w2_bytes = 0 if w2 is None else int(w2.size) * w2.dtype.itemsize * 2
        return h_bytes + a_bytes + acc_out + w2_bytes

    while tk > _LANE and _est(tk) > int(vmem_limit * 0.8):
        tk = _pick_tile(n_pad, tk - _LANE)

    grid = (n_pad // tm, n_pad // tk)
    h_spec = (pl.BlockSpec((n_pad, c_pad), lambda i, k: (0, 0)) if h_resident
              else pl.BlockSpec((tk, c_pad), lambda i, k: (k, 0)))
    in_specs = [
        pl.BlockSpec((tm, tk), lambda i, k: (i, k)),    # A' tile (streamed)
        h_spec,                                         # H (resident or k-tiled)
        pl.BlockSpec((tm, 1), lambda i, k: (i, 0)),     # deg^{-1/2} row scaling (f32)
        pl.BlockSpec((1, c_pad), lambda i, k: (0, 0)),  # bias (f32)
    ]
    operands = [a_pad, h, d_col, b_row]
    if w2 is not None:
        kernel = functools.partial(agg1_fused_kernel, tk=tk, h_resident=h_resident)
        in_specs.append(pl.BlockSpec((c_pad, c_pad), lambda i, k: (0, 0)))  # W2 resident
        operands.append(w2)
        scratch = [pltpu.VMEM((tm, c_pad), jnp.float32)]
        flops = 2 * n_pad * n_pad * c_pad + 2 * n_pad * c_pad * c_pad
    else:
        kernel = functools.partial(agg2_kernel, tk=tk, h_resident=h_resident)
        scratch = []
        flops = 2 * n_pad * n_pad * c_pad

    h_stream = 1 if h_resident else grid[0]
    bytes_accessed = int(
        a_pad.size * a_pad.dtype.itemsize
        + h.size * h.dtype.itemsize * h_stream
        + n_pad * c_pad * jnp.dtype(out_dtype).itemsize
    )
    return pl.pallas_call(
        kernel,
        out_shape=jax.ShapeDtypeStruct((n_pad, c_pad), out_dtype),
        grid_spec=pltpu.PrefetchScalarGridSpec(
            num_scalar_prefetch=0,
            grid=grid,
            in_specs=in_specs,
            out_specs=pl.BlockSpec((tm, c_pad), lambda i, k: (i, 0)),
            scratch_shapes=scratch,
        ),
        compiler_params=pltpu.CompilerParams(
            dimension_semantics=("parallel", "arbitrary"),
            vmem_limit_bytes=vmem_limit,
        ),
        cost_estimate=pl.CostEstimate(
            flops=flops, transcendentals=0, bytes_accessed=bytes_accessed),
    )(*operands)


# ---------------------------------------------------------------------------
# GCN glue (dense adjacency + D^{-1/2}) and forward
# ---------------------------------------------------------------------------
def gcn_dense_adj(edge_index, edge_weight, num_nodes, improved=True):
    """Dense A' = A + fill*I (remaining self-loops) and D^{-1/2}, all in f32.

    TODO(synk): replace the dense O(N^2) adjacency with a CSR / scalar-prefetch
    gather path for realistic sparse graphs.
    """
    src, dst = edge_index[0], edge_index[1]
    if edge_weight is None:
        edge_weight = jnp.ones((edge_index.shape[1],), dtype=jnp.float32)
    adj = jnp.zeros((num_nodes, num_nodes), dtype=jnp.float32)
    adj = adj.at[dst, src].add(edge_weight.astype(jnp.float32))
    fill = 2.0 if improved else 1.0
    has_loop = (
        jnp.zeros((num_nodes,), jnp.float32)
        .at[src].add((src == dst).astype(jnp.float32)) > 0
    )
    diag = jnp.arange(num_nodes)
    adj = adj.at[diag, diag].add(jnp.where(has_loop, 0.0, fill))
    deg = adj.sum(axis=1)
    deg_inv_sqrt = jnp.where(deg > 0, jax.lax.rsqrt(deg), 0.0)
    return adj, deg_inv_sqrt


def vanilla_gcn_forward(x, edge_index, w1, b1, w2, b2, edge_weight=None,
                        matmul_dtype=jnp.bfloat16, row_tile=512, k_tile=None,
                        h_resident=None):
    n, f = x.shape
    c = w2.shape[1]
    vmem_limit = _vmem_budget_bytes()
    if k_tile is None:
        k_tile = 4096 if vmem_limit >= 96 * 1024 * 1024 else 2048

    # Pad node count to a multiple of the row tile (never degrade to 128 tiles).
    n128 = _round_up(max(n, 1), _LANE)
    n_pad = n128 if n128 <= row_tile else _round_up(n128, row_tile)
    f_pad = _round_up(f, _LANE)
    c_pad = _round_up(c, _LANE)

    adj, d = gcn_dense_adj(edge_index, edge_weight, n, improved=True)
    # Keep the D^{-1/2} normalization in f32: fold the right factor into X / H
    # rows and apply the left factor at finalize; bf16 A' holds only raw weights.
    x_scaled = d[:, None] * x

    a_pad = _pad2d(adj, (n_pad, n_pad), matmul_dtype)
    x_pad = _pad2d(x_scaled, (n_pad, f_pad), matmul_dtype)
    w1_pad = _pad2d(w1, (f_pad, c_pad), matmul_dtype)
    w2_pad = _pad2d(w2, (c_pad, c_pad), matmul_dtype)
    b1_pad = _pad2d(jnp.reshape(b1, (1, -1)), (1, c_pad), jnp.float32)
    b2_pad = _pad2d(jnp.reshape(b2, (1, -1)), (1, c_pad), jnp.float32)
    d_pad = _pad2d(d.reshape(-1, 1), (n_pad, 1), jnp.float32)

    if h_resident is None:
        h_resident = (
            n_pad * c_pad * jnp.dtype(matmul_dtype).itemsize * 2 <= vmem_limit // 3
        )

    # conv1 feature transform: H1s = (D^{-1/2} X) @ W1
    h1 = _feat_transform(x_pad, w1_pad, matmul_dtype, row_tile, vmem_limit)
    # fused: conv1 aggregation + bias + ReLU + conv2 feature transform
    #   H2s = D^{-1/2} ReLU(D^{-1/2} A' H1s + b1) @ W2   (dropout = identity, eval)
    h2 = _aggregate(a_pad, h1, d_pad, b1_pad, w2_pad, matmul_dtype,
                    row_tile, k_tile, h_resident, vmem_limit)
    # conv2 aggregation (f32 output, accumulate directly in the resident o block)
    out = _aggregate(a_pad, h2, d_pad, b2_pad, None, jnp.float32,
                     row_tile, k_tile, h_resident, vmem_limit)
    return out[:n, :c]


def reference_forward(x, edge_index, w1, b1, w2, b2, edge_weight=None):
    adj, d = gcn_dense_adj(edge_index, edge_weight, x.shape[0], improved=True)
    a_hat = d[:, None] * adj * d[None, :]
    h = jnp.maximum(a_hat @ (x @ w1) + jnp.reshape(b1, (1, -1)), 0.0)
    return a_hat @ (h @ w2) + jnp.reshape(b2, (1, -1))


# ---------------------------------------------------------------------------
# Self-test
# ---------------------------------------------------------------------------
if __name__ == "__main__":
    def run_case(n, in_ch, ch, e, check_f32=True, check_bf16=True, **kw):
        key = jax.random.PRNGKey(0)
        k_x, k_e, k_w1, k_b1, k_w2, k_b2 = jax.random.split(key, 6)
        x = jax.random.normal(k_x, (n, in_ch), dtype=jnp.float32)
        edge_index = jax.random.randint(k_e, (2, e), 0, n, dtype=jnp.int32)
        w1 = jax.random.normal(k_w1, (in_ch, ch), jnp.float32) / jnp.sqrt(float(in_ch))
        b1 = jax.random.normal(k_b1, (ch,), jnp.float32) * 0.1
        w2 = jax.random.normal(k_w2, (ch, ch), jnp.float32) / jnp.sqrt(float(ch))
        b2 = jax.random.normal(k_b2, (ch,), jnp.float32) * 0.1

        ref = reference_forward(x, edge_index, w1, b1, w2, b2)
        if check_f32:
            out32 = jax.block_until_ready(vanilla_gcn_forward(
                x, edge_index, w1, b1, w2, b2, matmul_dtype=jnp.float32, **kw))
            assert out32.shape == (n, ch)
            assert jnp.allclose(out32, ref, atol=2e-4, rtol=2e-4), "f32 kernel mismatch"
        if check_bf16:
            out16 = jax.block_until_ready(vanilla_gcn_forward(
                x, edge_index, w1, b1, w2, b2, matmul_dtype=jnp.bfloat16, **kw))
            assert out16.shape == (n, ch)
            rel = jnp.max(jnp.abs(out16 - ref)) / (jnp.max(jnp.abs(ref)) + 1e-6)
            assert rel < 5e-2, f"bf16 kernel mismatch, rel err {rel}"

    # Small single-tile case (N=16 -> n_pad=128), both MXU dtypes.
    run_case(16, 8, 32, 40)
    # Multi-tile case: 3x3 (row, k) grid exercises accumulator init/finalize
    # across the reduction axis and the parallel row axis, with resident H.
    run_case(600, 12, 48, 2400, row_tile=256, k_tile=256, h_resident=True)
    # Same shapes with the k-tiled (non-resident) H fallback path (bf16 only).
    run_case(600, 12, 48, 2400, check_f32=False,
             row_tile=256, k_tile=256, h_resident=False)

    print("KERNEL_OK")
</pallas_src>

<mosaic_0001>
module attributes {stable_mosaic.version = 11 : i64} {
  func.func @feat_kernel(%arg0: i32, %arg1: memref<128x128xf32, #tpu.memory_space<vmem>>, %arg2: memref<128x128xf32, #tpu.memory_space<vmem>>, %arg3: memref<128x128xf32, #tpu.memory_space<vmem>>) attributes {dimension_semantics = [#tpu.dimension_semantics<parallel>], iteration_bounds = array<i64: 1>, scalar_prefetch = 0 : i64, scratch_operands = 0 : i64, tpu.core_type = #tpu.core_type<tc>, window_params = [{transform_indices = @transform_0, window_bounds = array<i64: 128, 128>}, {pipeline_mode = #tpu.pipeline_mode<synchronous>, transform_indices = @transform_1, window_bounds = array<i64: 128, 128>}, {transform_indices = @transform_2, window_bounds = array<i64: 128, 128>}]} {
    %c0 = arith.constant 0 : index
    %c0_0 = arith.constant 0 : index
    %0 = vector.load %arg1[%c0, %c0_0] : memref<128x128xf32, #tpu.memory_space<vmem>>, vector<128x128xf32>
    %c0_1 = arith.constant 0 : index
    %c0_2 = arith.constant 0 : index
    %1 = vector.load %arg2[%c0_1, %c0_2] : memref<128x128xf32, #tpu.memory_space<vmem>>, vector<128x128xf32>
    %cst = arith.constant dense<0.000000e+00> : vector<128x128xf32>
    %2 = tpu.matmul %0, %1, %cst {dimension_numbers = #tpu.dot_dimension_numbers<[1], [0], [0], [1], [0, 0, 1, 1], [], []>} : vector<128x128xf32>, vector<128x128xf32>, vector<128x128xf32> -> vector<128x128xf32>
    %c0_3 = arith.constant 0 : index
    %c0_4 = arith.constant 0 : index
    %3 = vector.load %arg3[%c0_3, %c0_4] : memref<128x128xf32, #tpu.memory_space<vmem>>, vector<128x128xf32>
    tpu.vector_store %arg3[%c0_3, %c0_4], %2 {strides = array<i32>} : memref<128x128xf32, #tpu.memory_space<vmem>>, vector<128x128xf32>,
    return
  }
  func.func @transform_0(%arg0: i32) -> (i32, i32) {
    %c0_i32 = arith.constant 0 : i32
    %c0_i32_0 = arith.constant 0 : i32
    return %arg0, %c0_i32 : i32, i32
  }
  func.func @transform_1(%arg0: i32) -> (i32, i32) {
    %c0_i32 = arith.constant 0 : i32
    %c0_i32_0 = arith.constant 0 : i32
    %c0_i32_1 = arith.constant 0 : i32
    return %c0_i32, %c0_i32_0 : i32, i32
  }
  func.func @transform_2(%arg0: i32) -> (i32, i32) {
    %c0_i32 = arith.constant 0 : i32
    %c0_i32_0 = arith.constant 0 : i32
    return %arg0, %c0_i32 : i32, i32
  }
}

</mosaic_0001>

<bundles_post_ra>
// kernel: tpu_custom_call.1
= control target key start
LH: loop header
LB: loop body
LE: loop exit
PB: predicated region body
PF: predicated region fallthrough
CT: control target
= control target key end

     0   :  { %7 = vsyncpa [#allocation3], 0  ;;  %s480_s0 = inlined_call_operand.hbm [shape: f32[128,128], index: 0, kind: input, shape index: {}]   ;;  %s481_s1 = inlined_call_operand.hbm [shape: f32[128,128], index: 1, kind: input, shape index: {}]   ;;  %s482_s2 = inlined_call_operand.hbm [shape: f32[128,128], index: 2, kind: output, shape index: {}]  }
   0x1   :  { %8 = vsyncpa [#allocation6], 0 }
   0x2   :  { %9 = vsyncpa [#allocation4], 0  ;;  %s442_s9 = smov [#allocation2]  }
   0x3   :  { %s15_s10 = sshll.u32 %s442_s9, 4  ;;  %s16_s10 = int_to_ptr.vmem [resolvable:$true] %s15_s10 }
   0x4   :  { %s384_s11 = scalar_lea.vmem %s16_s10, 2048  ;;  %p389_p1 = scmp.lt.s32.totalorder %s16_s10, %s16_s10 }
   0x5   :  { %p385_p0 = scmp.ne.s32.totalorder %s16_s10, %s384_s11  ;;  %p390_p2 = scmp.lt.s32.totalorder %s384_s11, %s384_s11 }
   0x7   :  { %p391_p3 = por %p390_p2, %p389_p1 }
   0x9   :  { %p392_p4 = pnand %p391_p3, %p385_p0 }
   0xb   :  { %395 = shalt.err (!%p392_p4)
}
   0xc   :  { %s443_s12 = smov 128   ;;  %s444_s13 = smov 8  }
   0xd   :  { %21 = dma.hbm_to_vmem [thread:$0]  %s480_s0, 2048, %s16_s10, [#allocation3], %s443_s12, %s443_s12, %s444_s13  }
   0xe   :  { %s445_s16 = smov [#allocation5]  }
   0xf   :  { %s27_s17 = sshll.u32 %s445_s16, 4  ;;  %s28_s17 = int_to_ptr.vmem [resolvable:$true] %s27_s17 }
  0x10   :  { %s404_s18 = scalar_lea.vmem %s28_s17, 2048  ;;  %p409_p6 = scmp.lt.s32.totalorder %s28_s17, %s28_s17 }
  0x11   :  { %p405_p5 = scmp.ne.s32.totalorder %s28_s17, %s404_s18  ;;  %p410_p7 = scmp.lt.s32.totalorder %s404_s18, %s404_s18 }
  0x13   :  { %p411_p8 = por %p410_p7, %p409_p6 }
  0x15   :  { %p412_p9 = pnand %p411_p8, %p405_p5 }
  0x17   :  { %415 = shalt.err (!%p412_p9)
}
  0x18   :  { %33 = dma.hbm_to_vmem [thread:$0]  %s481_s1, 2048, %s28_s17, [#allocation6], %s443_s12, %s443_s12, %s444_s13  }
  0x19   :  { %436 = dma.done.wait [#allocation3], 2048  }
  0x1a   :  { %437 = vsyncadd [#allocation3], 4294965248 }
  0x1b   :  { %438 = dma.done.wait [#allocation6], 2048  }
  0x1c   :  { %439 = vsyncadd [#allocation6], 4294965248  ;;  %v71_v0 = vld [vmem:[#allocation5 + $0x78] sm:$0xff]  ;;  %v70_v1 = vld [vmem:[#allocation5 + $0x70] sm:$0xff]  ;;  %s446_s0 = smov [#allocation7]  }
  0x1d   :  { %283 = vmatprep.subr.mxu0 %v71_v0  ;;  %339 = vmatprep.subr.mxu1 %v71_v0  ;;  %v69_v2 = vld [vmem:[#allocation5 + $0x68] sm:$0xff]  ;;  %v68_v3 = vld [vmem:[#allocation5 + $0x60] sm:$0xff]  ;;  %v67_v4 = vld [vmem:[#allocation5 + $0x58] sm:$0xff]  ;;  %s238_s1 = sshll.u32 %s446_s0, 4  ;;  %s239_s1 = int_to_ptr.vmem [resolvable:$true] %s238_s1 }
  0x1e   :  { %284 = vmatpush3.msra.mxu0 %v71_v0  ;;  %355 = vmatpush3.msra.mxu1 %v71_v0  ;;  %v66_v5 = vld [vmem:[#allocation5 + $0x50] sm:$0xff]  ;;  %v65_v6 = vld [vmem:[#allocation5 + $0x48] sm:$0xff]  ;;  %v64_v7 = vld [vmem:[#allocation5 + $0x40] sm:$0xff]  ;;  %s416_s21 = scalar_lea.vmem %s239_s1, 2048  ;;  %p421_p11 = scmp.lt.s32.totalorder %s239_s1, %s239_s1 }
  0x1f   :  { %285 = vmatprep.subr.mxu0 %v70_v1  ;;  %340 = vmatprep.subr.mxu1 %v70_v1  ;;  %v63_v8 = vld [vmem:[#allocation5 + $0x38] sm:$0xff]  ;;  %v62_v9 = vld [vmem:[#allocation5 + $0x30] sm:$0xff]  ;;  %v61_v10 = vld [vmem:[#allocation5 + $0x28] sm:$0xff]  ;;  %p417_p10 = scmp.ne.s32.totalorder %s239_s1, %s416_s21  ;;  %p422_p12 = scmp.lt.s32.totalorder %s416_s21, %s416_s21 }
  0x20   :  { %286 = vmatpush3.msra.mxu0 %v70_v1  ;;  %356 = vmatpush3.msra.mxu1 %v70_v1  ;;  %v60_v11 = vld [vmem:[#allocation5 + $0x20] sm:$0xff]  ;;  %v59_v12 = vld [vmem:[#allocation5 + $0x18] sm:$0xff]  ;;  %v58_v13 = vld [vmem:[#allocation5 + $0x10] sm:$0xff] }
  0x21   :  { %287 = vmatprep.subr.mxu0 %v69_v2  ;;  %341 = vmatprep.subr.mxu1 %v69_v2  ;;  %v57_v14 = vld [vmem:[#allocation5 + $0x8] sm:$0xff]  ;;  %v56_v15 = vld [vmem:[#allocation5] sm:$0xff]  ;;  %v42_v20 = vld [vmem:[#allocation2 + $0x10] sm:$0xff]  ;;  %p423_p13 = por %p422_p12, %p421_p11 }
  0x22   :  { %288 = vmatpush3.msra.mxu0 %v69_v2  ;;  %357 = vmatpush3.msra.mxu1 %v69_v2  ;;  %v40_v16 = vld [vmem:[#allocation2] sm:$0xff]  ;;  %v41_v18 = vld [vmem:[#allocation2 + $0x8] sm:$0xff]  ;;  %v50_v21 = vld [vmem:[#allocation2 + $0x50] sm:$0xff] }
  0x23   :  { %289 = vmatprep.subr.mxu0 %v68_v3  ;;  %342 = vmatprep.subr.mxu1 %v68_v3  ;;  %v48_v17 = vld [vmem:[#allocation2 + $0x40] sm:$0xff]  ;;  %v49_v19 = vld [vmem:[#allocation2 + $0x48] sm:$0xff]  ;;  %v43_v22 = vld [vmem:[#allocation2 + $0x18] sm:$0xff]  ;;  %p424_p0 = pnand %p423_p13, %p417_p10 }
  0x24   :  { %290 = vmatpush3.msra.mxu0 %v68_v3  ;;  %358 = vmatpush3.msra.mxu1 %v68_v3  ;;  %v51_v23 = vld [vmem:[#allocation2 + $0x58] sm:$0xff]  ;;  %v44_v24 = vld [vmem:[#allocation2 + $0x20] sm:$0xff]  ;;  %v45_v26 = vld [vmem:[#allocation2 + $0x28] sm:$0xff] }
  0x25   :  { %291 = vmatprep.subr.mxu0 %v67_v4  ;;  %343 = vmatprep.subr.mxu1 %v67_v4  ;;  %v52_v25 = vld [vmem:[#allocation2 + $0x60] sm:$0xff]  ;;  %v53_v27 = vld [vmem:[#allocation2 + $0x68] sm:$0xff]  ;;  %v46_v28 = vld [vmem:[#allocation2 + $0x30] sm:$0xff] }
  0x26   :  { %292 = vmatpush3.msra.mxu0 %v67_v4  ;;  %359 = vmatpush3.msra.mxu1 %v67_v4  ;;  %v54_v29 = vld [vmem:[#allocation2 + $0x70] sm:$0xff]  ;;  %v47_v30 = vld [vmem:[#allocation2 + $0x38] sm:$0xff] }
  0x27   :  { %293 = vmatprep.subr.mxu0 %v66_v5  ;;  %344 = vmatprep.subr.mxu1 %v66_v5  ;;  %v55_v31 = vld [vmem:[#allocation2 + $0x78] sm:$0xff] }
  0x28   :  { %294 = vmatpush3.msra.mxu0 %v66_v5  ;;  %360 = vmatpush3.msra.mxu1 %v66_v5 }
  0x29   :  { %295 = vmatprep.subr.mxu0 %v65_v6  ;;  %345 = vmatprep.subr.mxu1 %v65_v6 }
  0x2a   :  { %296 = vmatpush3.msra.mxu0 %v65_v6  ;;  %361 = vmatpush3.msra.mxu1 %v65_v6 }
  0x2b   :  { %297 = vmatprep.subr.mxu0 %v64_v7  ;;  %346 = vmatprep.subr.mxu1 %v64_v7 }
  0x2c   :  { %298 = vmatpush3.msra.mxu0 %v64_v7  ;;  %362 = vmatpush3.msra.mxu1 %v64_v7 }
  0x2d   :  { %299 = vmatprep.subr.mxu0 %v63_v8  ;;  %347 = vmatprep.subr.mxu1 %v63_v8 }
  0x2e   :  { %300 = vmatpush3.msra.mxu0 %v63_v8  ;;  %363 = vmatpush3.msra.mxu1 %v63_v8 }
  0x2f   :  { %301 = vmatprep.subr.mxu0 %v62_v9  ;;  %348 = vmatprep.subr.mxu1 %v62_v9 }
  0x30   :  { %302 = vmatpush3.msra.mxu0 %v62_v9  ;;  %364 = vmatpush3.msra.mxu1 %v62_v9 }
  0x31   :  { %303 = vmatprep.subr.mxu0 %v61_v10  ;;  %349 = vmatprep.subr.mxu1 %v61_v10 }
  0x32   :  { %304 = vmatpush3.msra.mxu0 %v61_v10  ;;  %365 = vmatpush3.msra.mxu1 %v61_v10 }
  0x33   :  { %305 = vmatprep.subr.mxu0 %v60_v11  ;;  %350 = vmatprep.subr.mxu1 %v60_v11 }
  0x34   :  { %306 = vmatpush3.msra.mxu0 %v60_v11  ;;  %366 = vmatpush3.msra.mxu1 %v60_v11 }
  0x35   :  { %307 = vmatprep.subr.mxu0 %v59_v12  ;;  %351 = vmatprep.subr.mxu1 %v59_v12 }
  0x36   :  { %308 = vmatpush3.msra.mxu0 %v59_v12  ;;  %367 = vmatpush3.msra.mxu1 %v59_v12 }
  0x37   :  { %309 = vmatprep.subr.mxu0 %v58_v13  ;;  %352 = vmatprep.subr.mxu1 %v58_v13 }
  0x38   :  { %310 = vmatpush3.msra.mxu0 %v58_v13  ;;  %368 = vmatpush3.msra.mxu1 %v58_v13 }
  0x39   :  { %311 = vmatprep.subr.mxu0 %v57_v14  ;;  %353 = vmatprep.subr.mxu1 %v57_v14 }
  0x3a   :  { %312 = vmatpush3.msra.mxu0 %v57_v14  ;;  %369 = vmatpush3.msra.mxu1 %v57_v14 }
  0x3b   :  { %313 = vmatprep.subr.mxu0 %v56_v15  ;;  %354 = vmatprep.subr.mxu1 %v56_v15 }
  0x3c   :  { %314 = vmatpush3.msra.mxu0 %v56_v15  ;;  %370 = vmatpush3.msra.mxu1 %v56_v15 }
  0x3d   :  { %315 = vmatprep.mubr.f32.mxu0 %v40_v16  ;;  %327 = vmatprep.mubr.f32.mxu1 %v48_v17 }
  0x3e   :  { %316 = vmatmul.mubr.f32.vlgmr.msra.gmra.mxu0 %v41_v18  ;;  %328 = vmatmul.mubr.f32.vlgmr.msra.gmra.mxu1 %v49_v19 }
  0x3f   :  { %318 = vmatprep.mubr.f32.mxu0 %v42_v20  ;;  %330 = vmatprep.mubr.f32.mxu1 %v50_v21 }
  0x42   :  { %319 = vmatmul.mubr.f32.gmra.mxu0 %v43_v22  ;;  %331 = vmatmul.mubr.f32.gmra.mxu1 %v51_v23 }
  0x43   :  { %321 = vmatprep.mubr.f32.mxu0 %v44_v24  ;;  %333 = vmatprep.mubr.f32.mxu1 %v52_v25 }
  0x46   :  { %322 = vmatmul.mubr.f32.gmra.mxu0 %v45_v26  ;;  %334 = vmatmul.mubr.f32.gmra.mxu1 %v53_v27 }
  0x47   :  { %324 = vmatprep.mubr.f32.mxu0 %v46_v28  ;;  %336 = vmatprep.mubr.f32.mxu1 %v54_v29 }
  0x4a   :  { %325 = vmatmul.mubr.f32.gmra.mxu0 %v47_v30  ;;  %337 = vmatmul.mubr.f32.gmra.mxu1 %v55_v31 }
  0xfe   :  { %v317_v32 = vpop.f32.mrf.mxu0  ;;  %v329_v33 = vpop.f32.mrf.mxu1 }
  0xff   :  { %218 = vst [vmem:[#allocation7 + $0x8] sm:$0xff] %v317_v32  ;;  %226 = vst [vmem:[#allocation7 + $0x48] sm:$0xff] %v329_v33 }
 0x100   :  { %v138_v34 = vpop.f32.mrf.mxu0  ;;  %v178_v35 = vpop.f32.mrf.mxu1 }
 0x101   :  { %217 = vst [vmem:[#allocation7] sm:$0xff] %v138_v34  ;;  %225 = vst [vmem:[#allocation7 + $0x40] sm:$0xff] %v178_v35 }
 0x102   :  { %v320_v36 = vpop.f32.mrf.mxu0  ;;  %v332_v37 = vpop.f32.mrf.mxu1 }
 0x103   :  { %220 = vst [vmem:[#allocation7 + $0x18] sm:$0xff] %v320_v36  ;;  %228 = vst [vmem:[#allocation7 + $0x58] sm:$0xff] %v332_v37 }
 0x104   :  { %v148_v38 = vpop.f32.mrf.mxu0  ;;  %v188_v39 = vpop.f32.mrf.mxu1 }
 0x105   :  { %219 = vst [vmem:[#allocation7 + $0x10] sm:$0xff] %v148_v38  ;;  %227 = vst [vmem:[#allocation7 + $0x50] sm:$0xff] %v188_v39 }
 0x106   :  { %v323_v40 = vpop.f32.mrf.mxu0  ;;  %v335_v41 = vpop.f32.mrf.mxu1 }
 0x107   :  { %222 = vst [vmem:[#allocation7 + $0x28] sm:$0xff] %v323_v40  ;;  %230 = vst [vmem:[#allocation7 + $0x68] sm:$0xff] %v335_v41 }
 0x108   :  { %v158_v42 = vpop.f32.mrf.mxu0  ;;  %v198_v43 = vpop.f32.mrf.mxu1 }
 0x109   :  { %221 = vst [vmem:[#allocation7 + $0x20] sm:$0xff] %v158_v42  ;;  %229 = vst [vmem:[#allocation7 + $0x60] sm:$0xff] %v198_v43 }
 0x10a   :  { %v326_v44 = vpop.f32.mrf.mxu0  ;;  %v338_v45 = vpop.f32.mrf.mxu1 }
 0x10b   :  { %224 = vst [vmem:[#allocation7 + $0x38] sm:$0xff] %v326_v44  ;;  %232 = vst [vmem:[#allocation7 + $0x78] sm:$0xff] %v338_v45 }
 0x10c   :  { %v168_v46 = vpop.f32.mrf.mxu0  ;;  %v208_v47 = vpop.f32.mrf.mxu1 }
 0x10d   :  { %223 = vst [vmem:[#allocation7 + $0x30] sm:$0xff] %v168_v46  ;;  %231 = vst [vmem:[#allocation7 + $0x70] sm:$0xff] %v208_v47 }
 0x10e   :  { %427 = shalt.err (!%p424_p0)
}
 0x10f   :  { %244 = dma.vmem_to_hbm [thread:$0]  %s239_s1, 2048, %s482_s2, [#allocation4], %s443_s12, %s443_s12, %s444_s13  }
 0x110   :  { %440 = dma.done.wait [#allocation4], 2048  }
 0x111   :  { %441 = vsyncadd [#allocation4], 4294965248 }
 0x112   :  { %248 = vsyncpa [#allocation3], 1 }
 0x113   :  { %249 = vsyncpa [#allocation6], 1 }
 0x114   :  { %250 = vsyncpa [#allocation4], 1 }

</bundles_post_ra>
